<compile_context>
chip_gen: v6e
topology: v6e:2x2x1
jax: 0.10.0
libtpu: 0.0.40
codegen_flags: <defaults>
</compile_context>

<pallas_src>
import math
from functools import partial

import jax
import jax.numpy as jnp
from jax.experimental import pallas as pl
from jax.experimental.pallas import tpu as pltpu


def _mqa_kernel(num_heads, d_k, scale,
                q_ref, k_ref,
                wq_ref, bq_ref, wk_ref, bk_ref, wv_ref, bv_ref, wo_ref, bo_ref,
                out_ref,
                qh_sc, ctx_sc):
    # q_ref: (1, TQ, D) bf16 query tile; k_ref: (1, S, D) bf16 full K sequence.
    TQ = q_ref.shape[1]
    Qb = q_ref[0]                                                     # (TQ, D)
    Kb = k_ref[0]                                                     # (S,  D)

    # --- Projections: bf16 MXU matmuls, f32 accumulation. --------------------
    # Fold 1/sqrt(d_k) into q once (TQ*D VPU ops instead of H*TQ*S on scores).
    q = (jnp.dot(Qb, wq_ref[...], preferred_element_type=jnp.float32)
         + bq_ref[...]) * scale                                       # (TQ, D) f32
    k = jnp.dot(Kb, wk_ref[...], preferred_element_type=jnp.float32) + bk_ref[...]  # (S, d_k)
    v = jnp.dot(Kb, wv_ref[...], preferred_element_type=jnp.float32) + bv_ref[...]  # (S, d_k)

    # --- Fold heads into the matmul M dimension (head-major rows). -----------
    # Cheap per-head loads/stores into a (H*TQ, d_k) VMEM slab; the expensive
    # score/context matmuls below are done once for ALL heads.
    for h in range(num_heads):
        qh_sc[h * TQ:(h + 1) * TQ, :] = q[:, h * d_k:(h + 1) * d_k]

    qh = qh_sc[...].astype(jnp.bfloat16)                              # (H*TQ, d_k)
    kb = k.astype(jnp.bfloat16)
    vb = v.astype(jnp.bfloat16)

    # Scores for all heads in one MXU matmul; contract the last axis of both
    # operands so no k.T is ever materialized.
    s = jax.lax.dot_general(qh, kb,
                            dimension_numbers=(((1,), (1,)), ((), ())),
                            preferred_element_type=jnp.float32)       # (H*TQ, S) f32

    # TODO(synk): optional attention mask (masked_fill) not implemented; the
    # reference forward default is mask=None.

    # --- Softmax in f32; denominator reciprocal on the EUP. -------------------
    m = jnp.max(s, axis=-1, keepdims=True)
    p = jnp.exp(s - m)
    l = jnp.sum(p, axis=-1, keepdims=True)
    w = p * pl.reciprocal(l, approx=True)

    # Context for all heads in one MXU matmul.
    ctx = jnp.dot(w.astype(jnp.bfloat16), vb,
                  preferred_element_type=jnp.float32)                 # (H*TQ, d_k)

    # Un-fold heads into a (TQ, D) slab (replaces jnp.concatenate).
    for h in range(num_heads):
        ctx_sc[:, h * d_k:(h + 1) * d_k] = ctx[h * TQ:(h + 1) * TQ, :]

    # --- Output projection. ----------------------------------------------------
    out = (jnp.dot(ctx_sc[...].astype(jnp.bfloat16), wo_ref[...],
                   preferred_element_type=jnp.float32) + bo_ref[...]) # (TQ, D)
    out_ref[0] = out.astype(out_ref.dtype)


def _pick_query_tile(seq_len):
    for tq in (256, 128):
        if seq_len % tq == 0:
            return tq
    return seq_len


def multi_query_attention(Q, K, V, params, num_heads):
    """Fused Pallas MQA forward. V is accepted but unused (matches the torch module)."""
    del V  # the reference forward derives both k and v from K
    B, S, D = Q.shape
    assert D % num_heads == 0
    d_k = D // num_heads
    wq, bq, wkv, bkv, wo, bo = params

    # Split the fused KV projection host-side so the kernel never slices k/v at
    # sub-128 lane offsets.
    wk, wv = wkv[:, :d_k], wkv[:, d_k:]
    bk, bv = bkv[:, :d_k], bkv[:, d_k:]

    # bf16 activations / weights for the MXU (f32 accumulation and f32 softmax
    # inside the kernel); biases stay f32 and are added to f32 accumulators.
    bf16 = jnp.bfloat16
    Qc = Q.astype(bf16)
    Kc = K.astype(bf16)
    wq_c, wk_c, wv_c, wo_c = (w.astype(bf16) for w in (wq, wk, wv, wo))

    tq = _pick_query_tile(S)
    n_q_tiles = S // tq
    scale = 1.0 / math.sqrt(float(d_k))
    kernel = partial(_mqa_kernel, num_heads, d_k, scale)

    # Weights / biases: whole arrays resident in VMEM once (single-buffered).
    def resident():
        return pl.BlockSpec(memory_space=pltpu.MemorySpace.VMEM)

    return pl.pallas_call(
        kernel,
        out_shape=jax.ShapeDtypeStruct((B, S, D), Q.dtype),
        grid=(B, n_q_tiles),
        in_specs=[
            pl.BlockSpec((1, tq, D), lambda b, t: (b, t, 0)),  # Q query tile
            pl.BlockSpec((1, S, D), lambda b, t: (b, 0, 0)),   # full K sequence
            resident(),  # W_q  (D, D)    bf16
            resident(),  # b_q  (1, D)    f32
            resident(),  # W_k  (D, d_k)  bf16
            resident(),  # b_k  (1, d_k)  f32
            resident(),  # W_v  (D, d_k)  bf16
            resident(),  # b_v  (1, d_k)  f32
            resident(),  # W_o  (D, D)    bf16
            resident(),  # b_o  (1, D)    f32
        ],
        out_specs=pl.BlockSpec((1, tq, D), lambda b, t: (b, t, 0)),
        scratch_shapes=[
            pltpu.VMEM((num_heads * tq, d_k), jnp.float32),  # head-folded q
            pltpu.VMEM((tq, D), jnp.float32),                # head-unfolded context
        ],
        compiler_params=pltpu.CompilerParams(
            dimension_semantics=("parallel", "parallel"),
            vmem_limit_bytes=64 * 1024 * 1024,
        ),
    )(Qc, Kc, wq_c, bq, wk_c, bk, wv_c, bv, wo_c, bo)


def reference_mqa(Q, K, params, num_heads):
    """Pure-JAX f32 reference mirroring the PyTorch forward exactly."""
    wq, bq, wkv, bkv, wo, bo = params
    B, S, D = Q.shape
    d_k = D // num_heads
    q = (Q @ wq + bq).reshape(B, S, num_heads, d_k).transpose(0, 2, 1, 3)   # (B,H,S,dk)
    kv = K @ wkv + bkv                                                      # (B,S,2*dk)
    k = kv[:, :, :d_k][:, None, :, :]                                       # (B,1,S,dk)
    v = kv[:, :, d_k:][:, None, :, :]                                       # (B,1,S,dk)
    scores = jnp.matmul(q, jnp.swapaxes(k, -1, -2)) / jnp.sqrt(jnp.float32(d_k))
    weights = jax.nn.softmax(scores, axis=-1)
    context = jnp.matmul(weights, v)                                        # (B,H,S,dk)
    context = context.transpose(0, 2, 1, 3).reshape(B, S, D)
    return context @ wo + bo


if __name__ == "__main__":
    # Small shapes consistent with the module: d_model divisible by num_heads.
    B, S, D, H = 2, 8, 32, 4
    d_k = D // H

    key = jax.random.PRNGKey(0)
    kq, kk, kv_, k1, k2, k3, k4, k5, k6 = jax.random.split(key, 9)

    Q = jax.random.normal(kq, (B, S, D), dtype=jnp.float32)
    K = jax.random.normal(kk, (B, S, D), dtype=jnp.float32)
    V = jax.random.normal(kv_, (B, S, D), dtype=jnp.float32)  # unused by forward, like torch

    scale = 0.05
    params = (
        scale * jax.random.normal(k1, (D, D), dtype=jnp.float32),        # W_q  (in, out)
        scale * jax.random.normal(k2, (1, D), dtype=jnp.float32),        # b_q
        scale * jax.random.normal(k3, (D, 2 * d_k), dtype=jnp.float32),  # W_kv (in, out)
        scale * jax.random.normal(k4, (1, 2 * d_k), dtype=jnp.float32),  # b_kv
        scale * jax.random.normal(k5, (D, D), dtype=jnp.float32),        # W_o  (in, out)
        scale * jax.random.normal(k6, (1, D), dtype=jnp.float32),        # b_o
    )

    out = multi_query_attention(Q, K, V, params, num_heads=H)
    out = jax.block_until_ready(out)

    ref = reference_mqa(Q, K, params, num_heads=H)
    assert out.shape == (B, S, D)
    # bf16 MXU inputs (f32 accumulation) => loosened tolerance vs the f32 reference.
    assert jnp.allclose(out, ref, atol=2e-2, rtol=2e-2), "Pallas output mismatch vs reference"

    print("KERNEL_OK")
</pallas_src>

<mosaic_0001>
module attributes {stable_mosaic.version = 11 : i64} {
  func.func @_mqa_kernel(%arg0: i32, %arg1: i32, %arg2: memref<1x8x32xbf16, #tpu.memory_space<vmem>>, %arg3: memref<1x8x32xbf16, #tpu.memory_space<vmem>>, %arg4: memref<32x32xbf16, #tpu.memory_space<vmem>>, %arg5: memref<1x32xf32, #tpu.memory_space<vmem>>, %arg6: memref<32x8xbf16, #tpu.memory_space<vmem>>, %arg7: memref<1x8xf32, #tpu.memory_space<vmem>>, %arg8: memref<32x8xbf16, #tpu.memory_space<vmem>>, %arg9: memref<1x8xf32, #tpu.memory_space<vmem>>, %arg10: memref<32x32xbf16, #tpu.memory_space<vmem>>, %arg11: memref<1x32xf32, #tpu.memory_space<vmem>>, %arg12: memref<1x8x32xf32, #tpu.memory_space<vmem>>, %arg13: memref<32x8xf32, #tpu.memory_space<vmem>>, %arg14: memref<8x32xf32, #tpu.memory_space<vmem>>) attributes {dimension_semantics = [#tpu.dimension_semantics<parallel>, #tpu.dimension_semantics<parallel>], iteration_bounds = array<i64: 2, 1>, scalar_prefetch = 0 : i64, scratch_operands = 2 : i64, tpu.core_type = #tpu.core_type<tc>, window_params = [{transform_indices = @transform_0, window_bounds = array<i64: 1, 8, 32>}, {transform_indices = @transform_1, window_bounds = array<i64: 1, 8, 32>}, {pipeline_mode = #tpu.pipeline_mode<synchronous>, transform_indices = @transform_2, window_bounds = array<i64: 32, 32>}, {pipeline_mode = #tpu.pipeline_mode<synchronous>, transform_indices = @transform_3, window_bounds = array<i64: 1, 32>}, {pipeline_mode = #tpu.pipeline_mode<synchronous>, transform_indices = @transform_4, window_bounds = array<i64: 32, 8>}, {pipeline_mode = #tpu.pipeline_mode<synchronous>, transform_indices = @transform_5, window_bounds = array<i64: 1, 8>}, {pipeline_mode = #tpu.pipeline_mode<synchronous>, transform_indices = @transform_6, window_bounds = array<i64: 32, 8>}, {pipeline_mode = #tpu.pipeline_mode<synchronous>, transform_indices = @transform_7, window_bounds = array<i64: 1, 8>}, {pipeline_mode = #tpu.pipeline_mode<synchronous>, transform_indices = @transform_8, window_bounds = array<i64: 32, 32>}, {pipeline_mode = #tpu.pipeline_mode<synchronous>, transform_indices = @transform_9, window_bounds = array<i64: 1, 32>}, {transform_indices = @transform_10, window_bounds = array<i64: 1, 8, 32>}]} {
    %c0 = arith.constant 0 : index
    %c0_0 = arith.constant 0 : index
    %c0_1 = arith.constant 0 : index
    %0 = vector.load %arg2[%c0, %c0_0, %c0_1] : memref<1x8x32xbf16, #tpu.memory_space<vmem>>, vector<1x8x32xbf16>
    %1 = vector.shape_cast %0 : vector<1x8x32xbf16> to vector<8x32xbf16>
    %c0_2 = arith.constant 0 : index
    %c0_3 = arith.constant 0 : index
    %c0_4 = arith.constant 0 : index
    %2 = vector.load %arg3[%c0_2, %c0_3, %c0_4] : memref<1x8x32xbf16, #tpu.memory_space<vmem>>, vector<1x8x32xbf16>
    %3 = vector.shape_cast %2 : vector<1x8x32xbf16> to vector<8x32xbf16>
    %c0_5 = arith.constant 0 : index
    %c0_6 = arith.constant 0 : index
    %4 = vector.load %arg4[%c0_5, %c0_6] : memref<32x32xbf16, #tpu.memory_space<vmem>>, vector<32x32xbf16>
    %cst = arith.constant dense<0.000000e+00> : vector<8x32xf32>
    %5 = tpu.matmul %1, %4, %cst {dimension_numbers = #tpu.dot_dimension_numbers<[1], [0], [0], [1], [0, 0, 1, 1], [], []>} : vector<8x32xbf16>, vector<32x32xbf16>, vector<8x32xf32> -> vector<8x32xf32>
    %c0_7 = arith.constant 0 : index
    %c0_8 = arith.constant 0 : index
    %6 = vector.load %arg5[%c0_7, %c0_8] : memref<1x32xf32, #tpu.memory_space<vmem>>, vector<1x32xf32>
    %7 = vector.broadcast %6 : vector<1x32xf32> to vector<8x32xf32>
    %8 = arith.addf %5, %7 : vector<8x32xf32>
    %cst_9 = arith.constant 0.353553385 : f32
    %9 = vector.broadcast %cst_9 : f32 to vector<8x32xf32>
    %10 = arith.mulf %8, %9 : vector<8x32xf32>
    %c0_10 = arith.constant 0 : index
    %c0_11 = arith.constant 0 : index
    %11 = vector.load %arg6[%c0_10, %c0_11] : memref<32x8xbf16, #tpu.memory_space<vmem>>, vector<32x8xbf16>
    %cst_12 = arith.constant dense<0.000000e+00> : vector<8x8xf32>
    %12 = tpu.matmul %3, %11, %cst_12 {dimension_numbers = #tpu.dot_dimension_numbers<[1], [0], [0], [1], [0, 0, 1, 1], [], []>} : vector<8x32xbf16>, vector<32x8xbf16>, vector<8x8xf32> -> vector<8x8xf32>
    %c0_13 = arith.constant 0 : index
    %c0_14 = arith.constant 0 : index
    %13 = vector.load %arg7[%c0_13, %c0_14] : memref<1x8xf32, #tpu.memory_space<vmem>>, vector<1x8xf32>
    %14 = vector.broadcast %13 : vector<1x8xf32> to vector<8x8xf32>
    %15 = arith.addf %12, %14 : vector<8x8xf32>
    %c0_15 = arith.constant 0 : index
    %c0_16 = arith.constant 0 : index
    %16 = vector.load %arg8[%c0_15, %c0_16] : memref<32x8xbf16, #tpu.memory_space<vmem>>, vector<32x8xbf16>
    %cst_17 = arith.constant dense<0.000000e+00> : vector<8x8xf32>
    %17 = tpu.matmul %3, %16, %cst_17 {dimension_numbers = #tpu.dot_dimension_numbers<[1], [0], [0], [1], [0, 0, 1, 1], [], []>} : vector<8x32xbf16>, vector<32x8xbf16>, vector<8x8xf32> -> vector<8x8xf32>
    %c0_18 = arith.constant 0 : index
    %c0_19 = arith.constant 0 : index
    %18 = vector.load %arg9[%c0_18, %c0_19] : memref<1x8xf32, #tpu.memory_space<vmem>>, vector<1x8xf32>
    %19 = vector.broadcast %18 : vector<1x8xf32> to vector<8x8xf32>
    %20 = arith.addf %17, %19 : vector<8x8xf32>
    %21 = vector.extract_strided_slice %10 {offsets = [0, 0], sizes = [8, 8], strides = [1, 1]} : vector<8x32xf32> to vector<8x8xf32>
    %c0_20 = arith.constant 0 : index
    %c0_21 = arith.constant 0 : index
    %22 = vector.load %arg13[%c0_20, %c0_21] : memref<32x8xf32, #tpu.memory_space<vmem>>, vector<8x8xf32>
    tpu.vector_store %arg13[%c0_20, %c0_21], %21 {strides = array<i32>} : memref<32x8xf32, #tpu.memory_space<vmem>>, vector<8x8xf32>,
    %23 = vector.extract_strided_slice %10 {offsets = [0, 8], sizes = [8, 8], strides = [1, 1]} : vector<8x32xf32> to vector<8x8xf32>
    %c8 = arith.constant 8 : index
    %c0_22 = arith.constant 0 : index
    %24 = vector.load %arg13[%c8, %c0_22] : memref<32x8xf32, #tpu.memory_space<vmem>>, vector<8x8xf32>
    tpu.vector_store %arg13[%c8, %c0_22], %23 {strides = array<i32>} : memref<32x8xf32, #tpu.memory_space<vmem>>, vector<8x8xf32>,
    %25 = vector.extract_strided_slice %10 {offsets = [0, 16], sizes = [8, 8], strides = [1, 1]} : vector<8x32xf32> to vector<8x8xf32>
    %c16 = arith.constant 16 : index
    %c0_23 = arith.constant 0 : index
    %26 = vector.load %arg13[%c16, %c0_23] : memref<32x8xf32, #tpu.memory_space<vmem>>, vector<8x8xf32>
    tpu.vector_store %arg13[%c16, %c0_23], %25 {strides = array<i32>} : memref<32x8xf32, #tpu.memory_space<vmem>>, vector<8x8xf32>,
    %27 = vector.extract_strided_slice %10 {offsets = [0, 24], sizes = [8, 8], strides = [1, 1]} : vector<8x32xf32> to vector<8x8xf32>
    %c24 = arith.constant 24 : index
    %c0_24 = arith.constant 0 : index
    %28 = vector.load %arg13[%c24, %c0_24] : memref<32x8xf32, #tpu.memory_space<vmem>>, vector<8x8xf32>
    tpu.vector_store %arg13[%c24, %c0_24], %27 {strides = array<i32>} : memref<32x8xf32, #tpu.memory_space<vmem>>, vector<8x8xf32>,
    %c0_25 = arith.constant 0 : index
    %c0_26 = arith.constant 0 : index
    %29 = vector.load %arg13[%c0_25, %c0_26] : memref<32x8xf32, #tpu.memory_space<vmem>>, vector<32x8xf32>
    %30 = arith.truncf %29 : vector<32x8xf32> to vector<32x8xbf16>
    %31 = arith.truncf %15 : vector<8x8xf32> to vector<8x8xbf16>
    %32 = arith.truncf %20 : vector<8x8xf32> to vector<8x8xbf16>
    %cst_27 = arith.constant dense<0.000000e+00> : vector<32x8xf32>
    %33 = tpu.matmul %30, %31, %cst_27 {dimension_numbers = #tpu.dot_dimension_numbers<[1], [1], [0], [0], [0, 0, 1, 0], [], []>} : vector<32x8xbf16>, vector<8x8xbf16>, vector<32x8xf32> -> vector<32x8xf32>
    %cst_28 = arith.constant dense<0xFF800000> : vector<32xf32>
    %34 = vector.multi_reduction <maximumf>, %33, %cst_28 [1] : vector<32x8xf32> to vector<32xf32>
    %35 = vector.shape_cast %34 : vector<32xf32> to vector<32x1xf32>
    %36 = vector.broadcast %35 : vector<32x1xf32> to vector<32x8xf32>
    %37 = arith.subf %33, %36 : vector<32x8xf32>
    %38 = math.exp %37 : vector<32x8xf32>
    %cst_29 = arith.constant dense<0.000000e+00> : vector<32xf32>
    %39 = vector.multi_reduction <add>, %38, %cst_29 [1] : vector<32x8xf32> to vector<32xf32>
    %40 = vector.shape_cast %39 : vector<32xf32> to vector<32x1xf32>
    %41 = tpu.reciprocal %40 {approx = true} : vector<32x1xf32> -> vector<32x1xf32>
    %42 = vector.broadcast %41 : vector<32x1xf32> to vector<32x8xf32>
    %43 = arith.mulf %38, %42 : vector<32x8xf32>
    %44 = arith.truncf %43 : vector<32x8xf32> to vector<32x8xbf16>
    %cst_30 = arith.constant dense<0.000000e+00> : vector<32x8xf32>
    %45 = tpu.matmul %44, %32, %cst_30 {dimension_numbers = #tpu.dot_dimension_numbers<[1], [0], [0], [1], [0, 0, 1, 1], [], []>} : vector<32x8xbf16>, vector<8x8xbf16>, vector<32x8xf32> -> vector<32x8xf32>
    %46 = vector.extract_strided_slice %45 {offsets = [0, 0], sizes = [8, 8], strides = [1, 1]} : vector<32x8xf32> to vector<8x8xf32>
    %c0_31 = arith.constant 0 : index
    %c0_32 = arith.constant 0 : index
    %47 = vector.load %arg14[%c0_31, %c0_32] : memref<8x32xf32, #tpu.memory_space<vmem>>, vector<8x8xf32>
    tpu.vector_store %arg14[%c0_31, %c0_32], %46 {strides = array<i32>} : memref<8x32xf32, #tpu.memory_space<vmem>>, vector<8x8xf32>,
    %48 = vector.extract_strided_slice %45 {offsets = [8, 0], sizes = [8, 8], strides = [1, 1]} : vector<32x8xf32> to vector<8x8xf32>
    %c0_33 = arith.constant 0 : index
    %c8_34 = arith.constant 8 : index
    %49 = vector.load %arg14[%c0_33, %c8_34] : memref<8x32xf32, #tpu.memory_space<vmem>>, vector<8x8xf32>
    tpu.vector_store %arg14[%c0_33, %c8_34], %48 {strides = array<i32>} : memref<8x32xf32, #tpu.memory_space<vmem>>, vector<8x8xf32>,
    %50 = vector.extract_strided_slice %45 {offsets = [16, 0], sizes = [8, 8], strides = [1, 1]} : vector<32x8xf32> to vector<8x8xf32>
    %c0_35 = arith.constant 0 : index
    %c16_36 = arith.constant 16 : index
    %51 = vector.load %arg14[%c0_35, %c16_36] : memref<8x32xf32, #tpu.memory_space<vmem>>, vector<8x8xf32>
    tpu.vector_store %arg14[%c0_35, %c16_36], %50 {strides = array<i32>} : memref<8x32xf32, #tpu.memory_space<vmem>>, vector<8x8xf32>,
    %52 = vector.extract_strided_slice %45 {offsets = [24, 0], sizes = [8, 8], strides = [1, 1]} : vector<32x8xf32> to vector<8x8xf32>
    %c0_37 = arith.constant 0 : index
    %c24_38 = arith.constant 24 : index
    %53 = vector.load %arg14[%c0_37, %c24_38] : memref<8x32xf32, #tpu.memory_space<vmem>>, vector<8x8xf32>
    tpu.vector_store %arg14[%c0_37, %c24_38], %52 {strides = array<i32>} : memref<8x32xf32, #tpu.memory_space<vmem>>, vector<8x8xf32>,
    %c0_39 = arith.constant 0 : index
    %c0_40 = arith.constant 0 : index
    %54 = vector.load %arg14[%c0_39, %c0_40] : memref<8x32xf32, #tpu.memory_space<vmem>>, vector<8x32xf32>
    %55 = arith.truncf %54 : vector<8x32xf32> to vector<8x32xbf16>
    %c0_41 = arith.constant 0 : index
    %c0_42 = arith.constant 0 : index
    %56 = vector.load %arg10[%c0_41, %c0_42] : memref<32x32xbf16, #tpu.memory_space<vmem>>, vector<32x32xbf16>
    %cst_43 = arith.constant dense<0.000000e+00> : vector<8x32xf32>
    %57 = tpu.matmul %55, %56, %cst_43 {dimension_numbers = #tpu.dot_dimension_numbers<[1], [0], [0], [1], [0, 0, 1, 1], [], []>} : vector<8x32xbf16>, vector<32x32xbf16>, vector<8x32xf32> -> vector<8x32xf32>
    %c0_44 = arith.constant 0 : index
    %c0_45 = arith.constant 0 : index
    %58 = vector.load %arg11[%c0_44, %c0_45] : memref<1x32xf32, #tpu.memory_space<vmem>>, vector<1x32xf32>
    %59 = vector.broadcast %58 : vector<1x32xf32> to vector<8x32xf32>
    %60 = arith.addf %57, %59 : vector<8x32xf32>
    %c0_46 = arith.constant 0 : index
    %c0_47 = arith.constant 0 : index
    %c0_48 = arith.constant 0 : index
    %61 = vector.load %arg12[%c0_46, %c0_47, %c0_48] : memref<1x8x32xf32, #tpu.memory_space<vmem>>, vector<1x8x32xf32>
    %62 = vector.shape_cast %61 : vector<1x8x32xf32> to vector<8x32xf32>
    %63 = vector.shape_cast %60 : vector<8x32xf32> to vector<1x8x32xf32>
    tpu.vector_store %arg12[%c0_46, %c0_47, %c0_48], %63 {strides = array<i32>} : memref<1x8x32xf32, #tpu.memory_space<vmem>>, vector<1x8x32xf32>,
    return
  }
  func.func @transform_0(%arg0: i32, %arg1: i32) -> (i32, i32, i32) {
    %c0_i32 = arith.constant 0 : i32
    %c0_i32_0 = arith.constant 0 : i32
    return %arg0, %arg1, %c0_i32 : i32, i32, i32
  }
  func.func @transform_1(%arg0: i32, %arg1: i32) -> (i32, i32, i32) {
    %c0_i32 = arith.constant 0 : i32
    %c0_i32_0 = arith.constant 0 : i32
    %c0_i32_1 = arith.constant 0 : i32
    return %arg0, %c0_i32, %c0_i32_0 : i32, i32, i32
  }
  func.func @transform_2(%arg0: i32, %arg1: i32) -> (i32, i32) {
    %c0_i32 = arith.constant 0 : i32
    %c0_i32_0 = arith.constant 0 : i32
    %c0_i32_1 = arith.constant 0 : i32
    return %c0_i32, %c0_i32_0 : i32, i32
  }
  func.func @transform_3(%arg0: i32, %arg1: i32) -> (i32, i32) {
    %c0_i32 = arith.constant 0 : i32
    %c0_i32_0 = arith.constant 0 : i32
    %c0_i32_1 = arith.constant 0 : i32
    return %c0_i32, %c0_i32_0 : i32, i32
  }
  func.func @transform_4(%arg0: i32, %arg1: i32) -> (i32, i32) {
    %c0_i32 = arith.constant 0 : i32
    %c0_i32_0 = arith.constant 0 : i32
    %c0_i32_1 = arith.constant 0 : i32
    return %c0_i32, %c0_i32_0 : i32, i32
  }
  func.func @transform_5(%arg0: i32, %arg1: i32) -> (i32, i32) {
    %c0_i32 = arith.constant 0 : i32
    %c0_i32_0 = arith.constant 0 : i32
    %c0_i32_1 = arith.constant 0 : i32
    return %c0_i32, %c0_i32_0 : i32, i32
  }
  func.func @transform_6(%arg0: i32, %arg1: i32) -> (i32, i32) {
    %c0_i32 = arith.constant 0 : i32
    %c0_i32_0 = arith.constant 0 : i32
    %c0_i32_1 = arith.constant 0 : i32
    return %c0_i32, %c0_i32_0 : i32, i32
  }
  func.func @transform_7(%arg0: i32, %arg1: i32) -> (i32, i32) {
    %c0_i32 = arith.constant 0 : i32
    %c0_i32_0 = arith.constant 0 : i32
    %c0_i32_1 = arith.constant 0 : i32
    return %c0_i32, %c0_i32_0 : i32, i32
  }
  func.func @transform_8(%arg0: i32, %arg1: i32) -> (i32, i32) {
    %c0_i32 = arith.constant 0 : i32
    %c0_i32_0 = arith.constant 0 : i32
    %c0_i32_1 = arith.constant 0 : i32
    return %c0_i32, %c0_i32_0 : i32, i32
  }
  func.func @transform_9(%arg0: i32, %arg1: i32) -> (i32, i32) {
    %c0_i32 = arith.constant 0 : i32
    %c0_i32_0 = arith.constant 0 : i32
    %c0_i32_1 = arith.constant 0 : i32
    return %c0_i32, %c0_i32_0 : i32, i32
  }
  func.func @transform_10(%arg0: i32, %arg1: i32) -> (i32, i32, i32) {
    %c0_i32 = arith.constant 0 : i32
    %c0_i32_0 = arith.constant 0 : i32
    return %arg0, %arg1, %c0_i32 : i32, i32, i32
  }
}

</mosaic_0001>

<bundles_post_ra>
// kernel: tpu_custom_call.1
= control target key start
LH: loop header
LB: loop body
LE: loop exit
PB: predicated region body
PF: predicated region fallthrough
CT: control target
= control target key end

     0   :  { %s1686_s0 = inlined_call_operand.vmem [shape: bf16[2,8,32], index: 0, kind: input, shape index: {}]   ;;  %s1687_s1 = inlined_call_operand.hbm [shape: bf16[2,8,32], index: 1, kind: input, shape index: {}]   ;;  %s1688_s2 = inlined_call_operand.vmem [shape: bf16[32,32], index: 2, kind: input, shape index: {}]   ;;  %s1689_s3 = inlined_call_operand.vmem [shape: f32[1,32], index: 3, kind: input, shape index: {}]   ;;  %s1690_s4 = inlined_call_operand.vmem [shape: bf16[32,8], index: 4, kind: input, shape index: {}]   ;;  %s1691_s5 = inlined_call_operand.hbm [shape: f32[1,8], index: 5, kind: input, shape index: {}]   ;;  %s1692_s6 = inlined_call_operand.vmem [shape: bf16[32,8], index: 6, kind: input, shape index: {}]   ;;  %s1693_s7 = inlined_call_operand.vmem [shape: f32[1,8], index: 7, kind: input, shape index: {}]   ;;  %s1694_s8 = inlined_call_operand.vmem [shape: bf16[32,32], index: 8, kind: input, shape index: {}]   ;;  %s1695_s9 = inlined_call_operand.vmem [shape: f32[1,32], index: 9, kind: input, shape index: {}]   ;;  %s1696_s10 = inlined_call_operand.hbm [shape: f32[2,8,32], index: 10, kind: output, shape index: {}]  }
   0x1   :  { %1703 = sst [smem:[#allocation17_spill]] %s1691_s5 }
   0x2   :  { %1704 = sst [smem:[#allocation18_spill]] %s1696_s10 }
   0x3   :  { %15 = vsyncpa [#allocation5], 0 }
   0x4   :  { %17 = vsyncpa [#allocation5 + $0x1], 0 }
   0x5   :  { %18 = vsyncpa [#allocation8], 0 }
   0x6   :  { %19 = vsyncpa [#allocation6], 0 }
   0x7   :  { %21 = vsyncpa [#allocation6 + $0x1], 0  ;;  %s1434_s13 = smov 0   ;;  %s1436_s14 = smov 0  }
   0x8   :  { %s1438_s15 = smov 0   ;;  %s1440_s16 = smov 0  }
   0x9   :  { %s1442_s17 = smov 0   ;;  %s1444_s18 = smov 0  }
   0xa LB: > { %1705 = sst [smem:[#allocation13_spill]] %s1346_s13  ;;  %s1023_s19 = sadd.s32 4294967295, %s1366_s18   ;;  %s1366_s18 = sphi %s1444_s18, %s27_s18   ;;  %s1362_s17 = sphi %s1442_s17, %s1725_s17   ;;  %s1358_s16 = sphi %s1440_s16, %s1724_s16   ;;  %s1354_s15 = sphi %s1438_s15, %s1728_s15   ;;  %s1350_s14 = sphi %s1436_s14, %s1727_s14   ;;  %s1346_s13 = sphi %s1434_s13, %s1726_s13  }
   0xb   : > { %1706 = sst [smem:[#allocation14_spill]] %s1362_s17  ;;  %s1024_s20 = sadd.s32 4294967294, %s1366_s18  }
   0xc   : > { %p87_p0 = scmp.ne.s32.totalorder %s1350_s14, %s1346_s13  ;;  %p1468_p1 = scmp.eq.s32.totalorder %s1023_s19, 0 }
   0xd   : > { %p1472_p2 = scmp.eq.s32.totalorder %s1023_s19, 1  ;;  %p287_p3 = scmp.eq.s32.totalorder %s1024_s20, 1 }
   0xe   : > { %p1478_p4 = por %p1468_p1, %p87_p0  ;;  %p1025_p5 = scmp.ge.s32.totalorder %s1366_s18, 1 }
   0xf   : > { %p1483_p6 = por %p287_p3, %p87_p0  ;;  %p294_p7 = scmp.lt.s32.totalorder %s1366_s18, 3 }
  0x10   : > { %s1709_s23 = scalar_select %p1478_p4, 1, 0 }
  0x11   : > { %s1710_s24 = scalar_select %p1483_p6, 1, 0 }
  0x12   : > { %p1488_p8 = pnand %p1025_p5, %p294_p7  ;;  %s1368_s26 = smov [#allocation7]  }
  0x13   : > { %1711 = sst [smem:[#allocation15_spill]] %s1710_s24  ;;  %s316_s27 = sshll.u32 %s1368_s26, 4  ;;  %s317_s27 = int_to_ptr.vmem [resolvable:$true] %s316_s27 }
  0x14   : > { %p1131_p10 = pneg %p1488_p8  ;;  %s39_s29 = sadd.s32 1, %s1362_s17 }
  0x15   : > { %s74_s30 = sadd.s32 1, %s1354_s15  ;;  %p41_p12 = scmp.ge.s32.totalorder %s39_s29, 2 }
  0x16   : > { %p1497_p11 = pnand %p1131_p10, %p1468_p1  ;;  %s1239_s11 = scalar_lea.vmem %s317_s27, 16 }
  0x17   : > { %p1240_p0 = scmp.ne.s32.totalorder %s317_s27, %s1239_s11  ;;  %s1246_s12 = scalar_lea.vmem %s317_s27, 32 }
  0x18   : > { %p1230_p13 = pneg %p1497_p11  ;;  %p1247_p7 = scmp.lt.s32.totalorder %s317_s27, %s317_s27 }
  0x19   : > { %p1248_p9 = scmp.lt.s32.totalorder %s1246_s12, %s1239_s11 }
  0x1a   : > { %p1242_p3 = pnand %p1240_p0, %p1230_p13 }
  0x1b   : > { %p1249_p6 = por %p1248_p9, %p1247_p7 }
  0x1c   : > { %p1243_p5 = pneg %p1242_p3 }
  0x1e   : > { %p1250_p4 = pnand %p1249_p6, %p1243_p5 }
  0x20   : > { %1253 = shalt.err (!%p1250_p4)
}
  0x21   : > { %s1714_s5 = sld [smem:[#allocation17_spill]]  ;;  %s1730_s29 = smov (%p41_p12, %s39_s29), 0 }
  0x22   : > { %1715 = sst [smem:[#allocation16_spill]] %s1730_s29  ;;  %p81_p6 = scmp.ne.s32.totalorder %s1354_s15, %s1350_s14 }
  0x23   : > { %p82_p4 = scmp.eq.s32.totalorder %s1366_s18, 0  ;;  %s71_s26 = ssub.s32 %s1362_s17, %s1730_s29 }
  0x24   : > { %p1144_p9 = scmp.lt.s32.totalorder %s1366_s18, 2  ;;  %p72_p10 = scmp.eq.s32.totalorder %s71_s26, 0 }
  0x25   : > { %p83_p13 = por %p82_p4, %p81_p6  ;;  %p1520_p0 = por %p1472_p2, %p81_p6 }
  0x26   : > { %s349_s11 = sand.u32 1, %s1354_s15   ;;  %s1029_s20 = sshll.u32 %s1362_s17, 6 }
  0x27   : > { %1134 = dma.hbm_to_vmem [thread:$0]  (!%p1497_p11), %s1714_s5, 16, %s317_s27, [#allocation8]  }
  0x28   : > { %s1526_s12 = scalar_select %p72_p10, %s1354_s15, %s74_s30  }
  0x29   : > { %s1028_s19 = sshll.u32 %s349_s11, 2  ;;  %s358_s24 = scalar_lea.hbm %s1687_s1, %s1029_s20 }
  0x2a   : > { %s353_s13 = scalar_lea.vmem [#allocation4], %s1028_s19  ;;  %p1532_p11 = pnand %p1144_p9, %p83_p13 }
  0x2b   : > { %s360_s10 = sshll.u32 %s353_s13, 4  ;;  %s350_s22 = scalar_lea.sflag [#allocation5], %s349_s11  ;;  %s361_s10 = int_to_ptr.vmem [resolvable:$true] %s360_s10 }
  0x2c   : > { %p1256_p2 = pneg %p1532_p11  ;;  %s1267_s29 = scalar_lea.vmem %s361_s10, 64 }
  0x2d   : > { %p1268_p12 = scmp.ne.s32.totalorder %s361_s10, %s1267_s29  ;;  %s1369_s30 = smov [#allocation4]  }
  0x2e   : > { %s1272_s17 = sshll.u32 %s1369_s30, 4  ;;  %s1273_s17 = int_to_ptr.vmem [resolvable:$false] %s1272_s17 }
  0x2f   : > { %p1270_p3 = pnand %p1268_p12, %p1256_p2  ;;  %s1274_s5 = scalar_lea.vmem %s1273_s17, 128 }
  0x30   : > { %p1275_p7 = scmp.lt.s32.totalorder %s361_s10, %s1273_s17  ;;  %p1276_p6 = scmp.lt.s32.totalorder %s1274_s5, %s1267_s29 }
  0x31   : > { %p1271_p5 = pneg %p1270_p3 }
  0x32   : > { %p1277_p4 = por %p1276_p6, %p1275_p7 }
  0x34   : > { %p1278_p10 = pnand %p1277_p4, %p1271_p5 }
  0x36   : > { %1281 = shalt.err (!%p1278_p10)
}
  0x37   : > { %1138 = dma.hbm_to_vmem [thread:$0]  (!%p1532_p11), %s358_s24, 64, %s361_s10, %s350_s22  }
  0x38   : > { %369 = sbr.rel (%p1488_p8) target bundleno = 1453 (0x5ad), region = 60  ;;  %s1543_s13 = sand.u32 (!%p1488_p8), 1, %s1350_s14  }
  0x39   : > { %s1031_s11 = sshll.u32 (!%p1488_p8), %s1543_s13, 2  ;;  %s372_s19 = scalar_lea.sflag (!%p1488_p8), [#allocation5], %s1543_s13 }
  0x3a   : > { %s375_s20 = scalar_lea.vmem (!%p1488_p8), [#allocation4], %s1031_s11  ;;  %p1718_p9 = scmp.ne.s32.totalorder (!%p1488_p8), %s1709_s23, 0 }
  0x3d   : > { %1333 = dma.done.wait (%p1718_p9), %s372_s19, 64  }
  0x3e   : > { %1335 = vsyncadd (%p1718_p9), %s372_s19, 4294967232 }
  0x3f   : > { %1337 = dma.done.wait (%p1468_p1), [#allocation8], 16  }
  0x40   : > { %1339 = vsyncadd (%p1468_p1), [#allocation8], 4294967280  ;;  %p423_p8 = scmp.lt.s32.totalorder %s1358_s16, 1  ;;  %v1370_v0 = vmov 0.0   ;;  %vm1371_vm0 = vmmov 0   ;;  %v1204_v1 = vld [vmem:[%s1688_s2 + $0x8] sm:$0xff]  }
  0x41   : > { %1077 = vmatprep.subr.bf16.mxu0 %v1370_v0  ;;  %1081 = vmatprep.mubr.msk.bf16.mxu0 %vm1371_vm0, %v1370_v0  ;;  %v1205_v2 = vld [vmem:[%s1688_s2] sm:$0xff]   ;;  %v1206_v3 = vld [vmem:[%s1690_s4 + $0x8] sm:$0xff]   ;;  %vm456_vm1 = vcmask 261120   ;;  %v1039_v10 = vld [vmem:[#allocation7] ss:$0 sm:$0xff]  ;;  %vm630_vm2 = vcmask 64512  }
  0x42   : > { %s424_s10 = scalar_select %p423_p8, %s1358_s16, 1  ;;  %1085 = vmatprep.subr.bf16.mxu1 %v1370_v0  ;;  %1089 = vmatprep.mubr.msk.bf16.mxu1 %vm1371_vm0, %v1370_v0  ;;  %v1207_v5 = vld [vmem:[%s1690_s4] sm:$0xff]   ;;  %v432_v6 = vld [vmem:[%s375_s20] sm:$0xf]  ;;  %vm763_vm3 = vcmask 1043456   ;;  %vm821_vm4 = vcmask 130112  }
  0x43   : > { %1078 = vmatpush3.bf16.msra.mxu0 %v1204_v1  ;;  %1086 = vmatpush3.bf16.msra.mxu1 %v1206_v3  ;;  %v1035_v7 = vld [vmem:[%s1689_s3] ss:$0 sm:$0xff]  ;;  %s1372_s20 = smov 104   ;;  %s1374_s23 = smov 112   ;;  %v1208_v31 = vld [vmem:[%s1692_s6 + $0x8] sm:$0xff]   ;;  %vm827_vm5 = vcmask 195712  }
  0x44   : > { %s1034_s17 = sshll.u32 %s424_s10, 2  ;;  %1079 = vmatprep.subr.bf16.mxu0 %v1370_v0  ;;  %1087 = vmatprep.subr.bf16.mxu1 %v1370_v0  ;;  %v1209_v32 = vld [vmem:[%s1692_s6] sm:$0xff]   ;;  %s1375_s19 = smov 16   ;;  %vm833_vm6 = vcmask 261312  }
  0x45   : > { %s429_s29 = scalar_lea.vmem %s1686_s0, %s1034_s17  ;;  %s1373_s17 = smov 120   ;;  %v1043_v61 = vld [vmem:[%s1693_s7] ss:$0 sm:$0xff] }
  0x46   : > { %v431_v4 = vld [vmem:[%s429_s29] sm:$0xf]  ;;  %s1376_s10 = smov 24   ;;  %s1056_s24 = sshll.u32 %s1358_s16, 7 }
  0x47   : > { %1080 = vmatpush3.bf16.msra.mxu0 %v1205_v2  ;;  %1088 = vmatpush3.bf16.msra.mxu1 %v1207_v5  ;;  %s1719_s22 = sld [smem:[#allocation18_spill]]  ;;  %s905_s5 = scalar_lea.sflag [#allocation6], %s1543_s13 }
  0x48   : > { %1093 = vmatprep.subr.bf16.mxu0 %v1370_v0  ;;  %s1378_s11 = smov [#allocation9]  }
  0x4a   : > { %1082 = vmatmul.mubr.msk.bf16.vlgmr.msra.gmra.mxu0 %vm456_vm1, %v431_v4  ;;  %1090 = vmatmul.mubr.msk.bf16.vlgmr.msra.gmra.mxu1 %vm456_vm1, %v432_v6 }
  0x4b   : > { %1097 = vmatprep.mubr.msk.bf16.mxu0 %vm1371_vm0, %v1370_v0  ;;  %1094 = vmatpush3.bf16.msra.mxu0 %v1208_v31 }
  0x4c   : > { %1095 = vmatprep.subr.bf16.mxu0 %v1370_v0 }
  0x4d   : > { %s1637_s30 = scalar_lea.hbm %s1719_s22, %s1056_s24 }
  0x4f   : > { %1096 = vmatpush3.bf16.msra.mxu0 %v1209_v32 }
  0x52   : > { %1098 = vmatmul.mubr.msk.bf16.vlgmr.msra.gmra.mxu0 %vm456_vm1, %v432_v6 }
 0x10a   : > { %v494_v8 = vpop.f32.mrf.mxu0  ;;  %v561_v13 = vpop.f32.mrf.mxu1 }
 0x10b   : > { %v495_v9 = vadd.f32 %v1035_v7, %v494_v8  ;;  %v562_v15 = vadd.f32 %v1039_v10, %v561_v13 }
 0x10c   : > { %v1083_v11 = vpop.f32.mrf.mxu0  ;;  %v1091_v16 = vpop.f32.mrf.mxu1 }
 0x10d   : > { %v500_v12 = vmul.f32 0.35355338, %v495_v9  ;;  %v651_v18 = vpack.c.bf16 %v562_v15, %v562_v15 }
 0x10e   : > { %v497_v14 = vpop.f32.mrf.mxu0  ;;  %v564_v19 = vpop.f32.mrf.mxu1 }
 0x10f   : > { %631 = vst.msk [vmem:[#allocation2] sm:$0xff] %vm630_vm2, %v500_v12  ;;  %641 = vrot.lane.b32.xlu1 %v500_v12, %s1372_s20  ;;  %633 = vrot.lane.b32.xlu0 %v500_v12, %s1373_s17  ;;  %v660_v20 = vsel %vm630_vm2, %v651_v18, 0  ;;  %s1377_s20 = smov 8   ;;  %s1033_s17 = sshll.u32 %s1543_s13, 3 }
 0x110   : > { %v1084_v17 = vpop.f32.mrf.mxu0  ;;  %1121 = vmatprep.subr.msk.bf16.mxu1 %vm630_vm2, %v651_v18  ;;  %v1092_v21 = vpop.f32.mrf.mxu1  ;;  %s422_s25 = scalar_lea.vmem [#allocation9], %s1033_s17 }
 0x111   : > { %1102 = vmatpush3.bf16.xpose.msra.mxu1 %v660_v20  ;;  %v1210_v20 = vld [vmem:[%s1694_s8 + $0x8] sm:$0xff]   ;;  %v1211_v21 = vld [vmem:[%s1694_s8] sm:$0xff]   ;;  %s919_s29 = sshll.u32 %s422_s25, 4  ;;  %s1639_s29 = int_to_ptr.vmem [resolvable:$true] %s919_s29 }
 0x112   : > { %1113 = vmatprep.subr.bf16.mxu1 %v1370_v0  ;;  %v624_v62 = vpop.f32.mrf.mxu0  ;;  %s1282_s16 = scalar_lea.vmem %s1639_s29, 128 }
 0x113   : > { %637 = vrot.lane.b32.xlu0 %v500_v12, %s1374_s23  ;;  %v625_v63 = vadd.f32 %v1043_v61, %v624_v62  ;;  %p1283_p1 = scmp.ne.s32.totalorder %s1639_s29, %s1282_s16 }
 0x114   : > { %v1099_v1 = vpop.f32.mrf.mxu0 }
 0x115   : > { %v652_v2 = vpack.c.bf16 %v625_v63, %v625_v63  ;;  %p1284_p13 = pnand %p1283_p1, %p1520_p0 }
 0x116   : > { %v645_v25 = vld [vmem:[#allocation2] sm:$0xff]  ;;  %v627_v3 = vpop.f32.mrf.mxu0 }
 0x117   : > { %v765_v4 = vsel %vm763_vm3, %v652_v2, 0  ;;  %1122 = vmatprep.subr.msk.bf16.mxu0 %vm763_vm3, %v652_v2  ;;  %p1285_p11 = pneg %p1284_p13 }
 0x118   : > { %v1100_v5 = vpop.f32.mrf.mxu0  ;;  %1108 = vmatpush3.bf16.msra.mxu0 %v765_v4 }
 0x181   : > { %v642_v22 = vpop.permute.xlu1 %641  ;;  %v634_v23 = vpop.permute.xlu0 %633 }
 0x182   : > { %644 = vst.msk [vmem:[#allocation2 + $0x18] sm:$0xff] %vm630_vm2, %v642_v22  ;;  %636 = vst.msk [vmem:[#allocation2 + $0x8] sm:$0xff] %vm630_vm2, %v634_v23 }
 0x185   : > { %v638_v24 = vpop.permute.xlu0 %637 }
 0x186   : > { %640 = vst.msk [vmem:[#allocation2 + $0x10] sm:$0xff] %vm630_vm2, %v638_v24 }
 0x189   : > { %v646_v26 = vld [vmem:[#allocation2 + $0x8] sm:$0xff]  ;;  %v648_v29 = vld [vmem:[#allocation2 + $0x18] sm:$0xff] }
 0x18a   : > { %v649_v27 = vpack.c.bf16 %v646_v26, %v645_v25 }
 0x18c   : > { %1103 = vmatprep.mubr.msk.bf16.mxu1 %vm630_vm2, %v649_v27 }
 0x18d   : > { %v647_v28 = vld [vmem:[#allocation2 + $0x10] sm:$0xff] }
 0x18e   : > { %v650_v30 = vpack.c.bf16 %v648_v29, %v647_v28 }
 0x190   : > { %1104 = vmatmul.mubr.msk.bf16.vlgmr.msra.gmra.mxu1 %vm630_vm2, %v650_v30  ;;  %v1051_v30 = vld [vmem:[%s1695_s9] ss:$0 sm:$0xff] }
 0x191   : > { %1117 = vmatprep.mubr.msk.bf16.mxu1 %vm1371_vm0, %v1370_v0  ;;  %1114 = vmatpush3.bf16.msra.mxu1 %v1210_v20 }
 0x192   : > { %1115 = vmatprep.subr.bf16.mxu1 %v1370_v0 }
 0x195   : > { %1116 = vmatpush3.bf16.msra.mxu1 %v1211_v21 }
 0x250   : > { %v1105_v33 = vpop.f32.mrf.mxu1 }
 0x251   : > { %v717_v40 = vsel %vm630_vm2, %v1105_v33, -inf }
 0x252   : > { %v696_v34 = vpop.f32.mrf.mxu1 }
 0x253   : > { %v711_v35 = vsel %vm630_vm2, %v696_v34, -inf }
 0x254   : > { %712 = vmax.xlane.f32.xlu1 %v711_v35  ;;  %v1106_v36 = vpop.f32.mrf.mxu1 }
 0x255   : > { %v720_v38 = vsel %vm630_vm2, %v1106_v36, -inf }
 0x256   : > { %v699_v37 = vpop.f32.mrf.mxu1 }
 0x257   : > { %v714_v39 = vsel %vm630_vm2, %v699_v37, -inf }
 0x258   : > { %721 = vmax.xlane.f32.xlu1 %v720_v38  ;;  %715 = vmax.xlane.f32.xlu0 %v714_v39 }
 0x25c   : > { %718 = vmax.xlane.f32.xlu0 %v717_v40 }
 0x2dd   : > { %v713_v41 = vpop.xlane.xlu1 %712 }
 0x2de   : > { %v723_v42 = vsub.f32 %v696_v34, %v713_v41 }
 0x2e0   : > { %v727_v43 = vmul.f32 1.442695, %v723_v42 }
 0x2e1   : > { %v722_v44 = vpop.xlane.xlu1 %721  ;;  %v716_v45 = vpop.xlane.xlu0 %715 }
 0x2e2   : > { %1212 = vpow2.f32 %v727_v43  ;;  %v726_v46 = vsub.f32 %v1106_v36, %v722_v44  ;;  %v724_v47 = vsub.f32 %v699_v37, %v716_v45 }
 0x2e4   : > { %v729_v48 = vmul.f32 1.442695, %v724_v47  ;;  %v733_v49 = vmul.f32 1.442695, %v726_v46 }
 0x2e5   : > { %v719_v50 = vpop.xlane.xlu0 %718 }
 0x2e6   : > { %v725_v51 = vsub.f32 %v1105_v33, %v719_v50  ;;  %1214 = vpow2.f32 %v729_v48 }
 0x2e7   : > { %1216 = vpow2.f32 %v733_v49 }
 0x2e8   : > { %v731_v52 = vmul.f32 1.442695, %v725_v51 }
 0x2ea   : > { %1218 = vpow2.f32 %v731_v52 }
 0x2ef   : > { %v1213_v53 = vpop.eup %1212 }
 0x2f0   : > { %v735_v54 = vsel %vm630_vm2, %v1213_v53, 0.0 }
 0x2f1   : > { %736 = vadd.xlane.f32.xlu0 %v735_v54 }
 0x2f3   : > { %v1215_v55 = vpop.eup %1214 }
 0x2f4   : > { %v738_v56 = vsel %vm630_vm2, %v1215_v55, 0.0  ;;  %v1217_v57 = vpop.eup %1216 }
 0x2f5   : > { %739 = vadd.xlane.f32.xlu1 %v738_v56  ;;  %v744_v60 = vsel %vm630_vm2, %v1217_v57, 0.0 }
 0x2f7   : > { %v1219_v58 = vpop.eup %1218 }
 0x2f8   : > { %v741_v59 = vsel %vm630_vm2, %v1219_v58, 0.0 }
 0x2f9   : > { %742 = vadd.xlane.f32.xlu0 %v741_v59  ;;  %745 = vadd.xlane.f32.xlu1 %v744_v60 }
 0x37a   : > { %v737_v6 = vpop.xlane.xlu0 %736 }
 0x37b   : > { %1220 = vrcp.f32 %v737_v6 }
 0x37e   : > { %v740_v7 = vpop.xlane.xlu1 %739 }
 0x37f   : > { %1222 = vrcp.f32 %v740_v7 }
 0x382   : > { %v743_v8 = vpop.xlane.xlu0 %742  ;;  %v746_v9 = vpop.xlane.xlu1 %745 }
 0x383   : > { %1224 = vrcp.f32 %v743_v8 }
 0x384   : > { %1226 = vrcp.f32 %v746_v9 }
 0x388   : > { %v1221_v10 = vpop.eup %1220 }
 0x389   : > { %v751_v12 = vmul.f32 %v1221_v10, %v1213_v53 }
 0x38c   : > { %v1223_v11 = vpop.eup %1222 }
 0x38d   : > { %v752_v13 = vmul.f32 %v1223_v11, %v1215_v55 }
 0x38f   : > { %v755_v15 = vpack.c.bf16 %v752_v13, %v751_v12 }
 0x390   : > { %v1225_v14 = vpop.eup %1224 }
 0x391   : > { %v1227_v16 = vpop.eup %1226  ;;  %v753_v17 = vmul.f32 %v1225_v14, %v1219_v58  ;;  %1109 = vmatprep.mubr.msk.bf16.mxu0 %vm630_vm2, %v755_v15 }
 0x392   : > { %v754_v18 = vmul.f32 %v1227_v16, %v1217_v57 }
 0x394   : > { %v756_v19 = vpack.c.bf16 %v754_v18, %v753_v17 }
 0x396   : > { %1110 = vmatmul.mubr.msk.bf16.vlgmr.msra.gmra.mxu0 %vm630_vm2, %v756_v19 }
 0x456   : > { %v1111_v22 = vpop.f32.mrf.mxu0 }
 0x457   : > { %824 = vrot.lane.b32.xlu1 %v1111_v22, %s1375_s19  ;;  %s1286_s19 = sshll.u32 %s1378_s11, 4  ;;  %s1287_s19 = int_to_ptr.vmem [resolvable:$false] %s1286_s19 }
 0x458   : > { %v801_v23 = vpop.f32.mrf.mxu0  ;;  %p1289_p2 = scmp.lt.s32.totalorder %s1639_s29, %s1287_s19 }
 0x459   : > { %816 = vst.msk [vmem:[#allocation3] sm:$0xff] %vm630_vm2, %v801_v23 }
 0x45a   : > { %v1112_v24 = vpop.f32.mrf.mxu0 }
 0x45b   : > { %830 = vrot.lane.b32.xlu1 %v1112_v24, %s1376_s10  ;;  %s1288_s10 = scalar_lea.vmem %s1287_s19, 256 }
 0x45c   : > { %v804_v25 = vpop.f32.mrf.mxu0  ;;  %p1290_p12 = scmp.lt.s32.totalorder %s1288_s10, %s1282_s16 }
 0x45d   : > { %818 = vrot.lane.b32.xlu0 %v804_v25, %s1377_s20 }
 0x45e   : > { %p1291_p3 = por %p1290_p12, %p1289_p2 }
 0x460   : > { %p1292_p5 = pnand %p1291_p3, %p1285_p11 }
 0x4c9   : > { %v825_v26 = vpop.permute.xlu1 %824 }
 0x4cd   : > { %v831_v27 = vpop.permute.xlu1 %830 }
 0x4cf   : > { %v819_v0 = vpop.permute.xlu0 %818 }
 0x4d0   : > { %822 = vst.msk [vmem:[#allocation3] sm:$0xff] %vm821_vm4, %v819_v0 }
 0x4d1   : > { %828 = vst.msk [vmem:[#allocation3] sm:$0xff] %vm827_vm5, %v825_v26 }
 0x4d2   : > { %834 = vst.msk [vmem:[#allocation3] sm:$0xff] %vm833_vm6, %v831_v27 }
 0x4d9   : > { %v835_v28 = vld [vmem:[#allocation3] sm:$0xff] }
 0x4da   : > { %v836_v29 = vpack.c.bf16 %v835_v28, %v835_v28 }
 0x4dc   : > { %1118 = vmatmul.mubr.msk.bf16.vlgmr.msra.gmra.mxu1 %vm456_vm1, %v836_v29 }
 0x59c   : > { %v897_v31 = vpop.f32.mrf.mxu1 }
 0x59d   : > { %v898_v32 = vadd.f32 %v1051_v30, %v897_v31 }
 0x59e   : > { %v1119_v33 = vpop.f32.mrf.mxu1 }
 0x59f   : > { %903 = vst.msk [vmem:[%s422_s25] sm:$0xff] %vm456_vm1, %v898_v32 }
 0x5a0   : > { %v900_v34 = vpop.f32.mrf.mxu1 }
 0x5a1   : > { %1295 = shalt.err (!%p1292_p5)
}
 0x5a2   : > { %s1296_s20 = scalar_lea.hbm %s1637_s30, 128  ;;  %s1300_s23 = scalar_lea.hbm %s1719_s22, 256 }
 0x5a3   : > { %p1297_p7 = scmp.ne.s32.totalorder %s1637_s30, %s1296_s20  ;;  %p1301_p10 = scmp.lt.s32.totalorder %s1637_s30, %s1719_s22 }
 0x5a4   : > { %p1302_p9 = scmp.lt.s32.totalorder %s1300_s23, %s1296_s20 }
 0x5a5   : > { %p1298_p6 = pnand %p1297_p7, %p1520_p0 }
 0x5a6   : > { %p1303_p8 = por %p1302_p9, %p1301_p10 }
 0x5a7   : > { %p1299_p4 = pneg %p1298_p6 }
 0x5a9   : > { %p1304_p1 = pnand %p1303_p8, %p1299_p4 }
 0x5ab   : > { %1307 = shalt.err (!%p1304_p1)
}
 0x5ac   : > { %1129 = dma.vmem_to_hbm [thread:$0]  (%p1520_p0), %s1639_s29, 128, %s1637_s30, %s905_s5   ;;  %v1120_v35 = vpop.f32.mrf.mxu1 }
 0x5ad PF: > { %s1720_s25 = sld [smem:[#allocation13_spill]]  ;;  %p1723_p11 = scmp.ge.s32.totalorder %s1366_s18, 2 }
 0x5ae   : > { %s1721_s27 = sld [smem:[#allocation15_spill]] }
 0x5b3   : > { %s931_s26 = sand.u32 1, %s1720_s25  }
 0x5b4   : > { %p1722_p13 = scmp.ne.s32.totalorder %s1721_s27, 0  ;;  %s932_s16 = scalar_lea.sflag [#allocation6], %s931_s26 }
 0x5b6   : > { %p1140_p2 = pnand %p1723_p11, %p1722_p13 }
 0x5b8   : > { %p1141_p12 = pneg %p1140_p2 }
 0x5ba   : > { %1341 = dma.done.wait (%p1141_p12), %s932_s16, 128  }
 0x5bb   : > { %1343 = vsyncadd (%p1141_p12), %s932_s16, 4294967168  ;;  %s27_s18 = sadd.s32 1, %s1366_s18   ;;  %s1724_s16 = sld [smem:[#allocation14_spill]] }
 0x5bc   : > { %p24_p3 = scmp.ge.s32.totalorder %s27_s18, 4   ;;  %s1725_s17 = sld [smem:[#allocation16_spill]] }
 0x5bd   : > { %s1726_s13 = smov %s1350_s14  ;;  %s1727_s14 = smov %s1354_s15 }
 0x5be   : > { %s1728_s15 = smov %s1526_s12  ;;  %26 = sbr.rel (!%p24_p3) target bundleno = 10 (0xa), region = 112 }
 0x5c3   :  { %937 = vsyncpa [#allocation5], 1 }
 0x5c4   :  { %939 = vsyncpa [#allocation5 + $0x1], 1 }
 0x5c5   :  { %940 = vsyncpa [#allocation8], 1 }
 0x5c6   :  { %941 = vsyncpa [#allocation6], 1 }
 0x5c7   :  { %943 = vsyncpa [#allocation6 + $0x1], 1 }

</bundles_post_ra>
